<compile_context>
chip_gen: v5e
topology: v5e:2x2
jax: 0.10.0
libtpu: 0.0.40
codegen_flags: <defaults>
</compile_context>

<pallas_src>
import functools
import math

import jax
import jax.numpy as jnp
from jax import lax
from jax.experimental import pallas as pl
from jax.experimental.pallas import tpu as pltpu


def _round_up(x, m):
    return ((x + m - 1) // m) * m


# ----------------------------------------------------------------------------
# Fused BN(affine) + ReLU + zero-pad mask + Conv3d(3x3x3, pad=1, no bias).
#
# One grid step produces one (Cout, T) tile of the output for one batch
# element, where the T columns index the flattened *padded* spatial volume
# (Dp*Hp*Wp).  Every conv tap is then a uniform column offset, so the current
# block plus a one-block halo covers all 27 taps.
# ----------------------------------------------------------------------------
def bn_relu_conv3d_kernel(x_ref, xh_ref, m_ref, mh_ref, w_ref, scale_ref,
                          shift_ref, o_ref, col_ref, *,
                          tap_offsets, block_cols, cin_p):
    # x_ref / xh_ref : (1, Cin_p, T) f32   current block / +1 halo block
    # m_ref / mh_ref : (1, T)        f32   1.0 inside valid volume, 0.0 on the
    #                                      conv zero-pad ring and tail pad
    # w_ref          : (Cout, 27*Cin_p)    folded conv weights (compute dtype)
    # scale/shift    : (Cin_p, 1)    f32   folded BatchNorm affine
    # o_ref          : (1, Cout, T)  f32   lane-dense output tile
    # col_ref        : (27*Cin_p, T) f32   VMEM im2col scratch
    x = jnp.concatenate([x_ref[0], xh_ref[0]], axis=1)        # (Cin_p, 2T)
    m = jnp.concatenate([m_ref[...], mh_ref[...]], axis=1)    # (1, 2T)

    # BatchNorm affine + ReLU (f32, lane-dense VPU work), then force the
    # padded ring back to zero (Conv3d zero-pads relu(bn(x))).
    a = jnp.maximum(x * scale_ref[...] + shift_ref[...], 0.0) * m

    # im2col: 27 static lane-offset slices become rows of the contraction dim.
    # Each store is a full (Cin_p, T) sublane-aligned tile store.
    for t, off in enumerate(tap_offsets):
        col_ref[t * cin_p:(t + 1) * cin_p, :] = a[:, off:off + block_cols]

    # Single K = 27*Cin_p matmul on the MXU (bf16 operands by default,
    # f32 accumulation), producing the whole lane-dense output tile.
    col = col_ref[...].astype(w_ref.dtype)
    o_ref[0] = jnp.dot(w_ref[...], col,
                       preferred_element_type=jnp.float32).astype(o_ref.dtype)


# ----------------------------------------------------------------------------
# Wrapper: BasicBlock.forward
# ----------------------------------------------------------------------------
def basic_block_forward(x_ncdhw, gamma, beta, conv_w, eps=1e-5,
                        compute_dtype=jnp.bfloat16, block_cols=None):
    """x_ncdhw: (N, Cin, D, H, W) f32; conv_w: (Cout, Cin, 3, 3, 3) PyTorch OIDHW."""
    N, Cin, D, H, W = x_ncdhw.shape
    Cout = conv_w.shape[0]
    x32 = x_ncdhw.astype(jnp.float32)

    # ---- BatchNorm3d training-mode batch statistics (plain jnp per review:
    #      XLA fuses this small reduction; two-pass variance is stable).
    mean = jnp.mean(x32, axis=(0, 2, 3, 4))
    var = jnp.mean(jnp.square(x32 - mean[None, :, None, None, None]),
                   axis=(0, 2, 3, 4))                      # biased var
    inv_std = gamma.astype(jnp.float32) / jnp.sqrt(jnp.maximum(var, 0.0) + eps)
    scale_c = inv_std
    shift_c = beta.astype(jnp.float32) - mean * inv_std

    # ---- geometry of the flattened padded volume ----
    Dp, Hp, Wp = D + 2, H + 2, W + 2
    P = Dp * Hp * Wp
    tap_offsets = tuple(kd * Hp * Wp + kh * Wp + kw
                        for kd in range(3) for kh in range(3) for kw in range(3))
    max_off = max(tap_offsets)

    Cin_p = _round_up(Cin, 8)                  # sublane-aligned channel count
    Kp = 27 * Cin_p                            # matmul contraction size
    if block_cols is None:
        # one-block halo must cover the largest tap offset; keep lane-dense.
        block_cols = max(256, _round_up(max_off, 128))
    T = block_cols
    assert T % 128 == 0 and T >= max_off, (T, max_off)
    nblk = pl.cdiv(P, T)
    P_out = nblk * T
    P_in = (nblk + 1) * T                      # +1 zero halo block at the tail

    # ---- operands in channel-major (native NCDHW) layout ----
    x_pad = jnp.pad(x32, ((0, 0), (0, Cin_p - Cin), (1, 1), (1, 1), (1, 1)))
    x_flat = jnp.pad(x_pad.reshape(N, Cin_p, P), ((0, 0), (0, 0), (0, P_in - P)))

    mask = jnp.pad(jnp.ones((D, H, W), jnp.float32),
                   ((1, 1), (1, 1), (1, 1))).reshape(1, P)
    mask = jnp.pad(mask, ((0, 0), (0, P_in - P)))           # (1, P_in)

    # conv weights -> (Cout, 27*Cin_p), tap-major / channel-minor, zero-padded
    # channel rows; single 2-D weight operand for the one big matmul.
    w_t = jnp.transpose(conv_w.astype(jnp.float32), (2, 3, 4, 1, 0))  # (3,3,3,Cin,Cout)
    w_t = w_t.reshape(27, Cin, Cout)
    w_t = jnp.pad(w_t, ((0, 0), (0, Cin_p - Cin), (0, 0)))            # (27,Cin_p,Cout)
    w2 = jnp.transpose(w_t.reshape(Kp, Cout), (1, 0)).astype(compute_dtype)

    scale = jnp.pad(scale_c, (0, Cin_p - Cin)).reshape(Cin_p, 1)
    shift = jnp.pad(shift_c, (0, Cin_p - Cin)).reshape(Cin_p, 1)

    kern = functools.partial(bn_relu_conv3d_kernel,
                             tap_offsets=tap_offsets, block_cols=T, cin_p=Cin_p)

    out_flat = pl.pallas_call(
        kern,
        grid=(N, nblk),
        in_specs=[
            pl.BlockSpec((1, Cin_p, T), lambda n, j: (n, 0, j)),      # current
            pl.BlockSpec((1, Cin_p, T), lambda n, j: (n, 0, j + 1)),  # halo
            pl.BlockSpec((1, T), lambda n, j: (0, j)),                # mask cur
            pl.BlockSpec((1, T), lambda n, j: (0, j + 1)),            # mask halo
            pl.BlockSpec((Cout, Kp), lambda n, j: (0, 0)),            # weights
            pl.BlockSpec((Cin_p, 1), lambda n, j: (0, 0)),            # BN scale
            pl.BlockSpec((Cin_p, 1), lambda n, j: (0, 0)),            # BN shift
        ],
        out_specs=pl.BlockSpec((1, Cout, T), lambda n, j: (n, 0, j)),
        out_shape=jax.ShapeDtypeStruct((N, Cout, P_out), jnp.float32),
        scratch_shapes=[pltpu.VMEM((Kp, T), jnp.float32)],            # im2col
        compiler_params=pltpu.CompilerParams(
            dimension_semantics=("parallel", "parallel")),
    )(x_flat, x_flat, mask, mask, w2, scale, shift)

    # Keep the valid (D,H,W) corner of the padded output grid (already NCDHW,
    # so no transpose); XLA fuses the slice into the concat copy below.
    out = out_flat[:, :, :P].reshape(N, Cout, Dp, Hp, Wp)[:, :, :D, :H, :W]

    # TODO(synk): F.dropout for dropRate > 0 not ported; module default is 0.0.

    return jnp.concatenate([x_ncdhw.astype(jnp.float32), out], axis=1)


# ----------------------------------------------------------------------------
# Pure-JAX reference (faithful port of the PyTorch forward, training-mode BN).
# ----------------------------------------------------------------------------
def reference(x_ncdhw, gamma, beta, conv_w, eps=1e-5):
    x = x_ncdhw.astype(jnp.float32)
    mean = jnp.mean(x, axis=(0, 2, 3, 4), keepdims=True)
    var = jnp.mean((x - mean) ** 2, axis=(0, 2, 3, 4), keepdims=True)
    g = gamma.reshape(1, -1, 1, 1, 1)
    b = beta.reshape(1, -1, 1, 1, 1)
    a = jnp.maximum(g * (x - mean) / jnp.sqrt(var + eps) + b, 0.0)
    out = lax.conv_general_dilated(
        a, conv_w.astype(jnp.float32), window_strides=(1, 1, 1),
        padding=((1, 1), (1, 1), (1, 1)),
        dimension_numbers=("NCDHW", "OIDHW", "NCDHW"))
    return jnp.concatenate([x, out], axis=1)


if __name__ == "__main__":
    key = jax.random.PRNGKey(0)
    k_x, k_w, k_g, k_b = jax.random.split(key, 4)

    # in_planes=4, out_planes=8, batch=2, spatial D=H=W=8 (input is NCDHW)
    N, Cin, Cout, D, H, W = 2, 4, 8, 8, 8, 8
    x = jax.random.normal(k_x, (N, Cin, D, H, W), jnp.float32)

    # Non-trivial BN affine params so the padding/mask path is exercised.
    gamma = jax.random.uniform(k_g, (Cin,), jnp.float32, 0.5, 1.5)
    beta = jax.random.normal(k_b, (Cin,), jnp.float32) * 0.5
    fan_in = Cin * 27
    bound = 1.0 / math.sqrt(fan_in)
    conv_w = jax.random.uniform(k_w, (Cout, Cin, 3, 3, 3), jnp.float32, -bound, bound)

    y_ref = reference(x, gamma, beta, conv_w)

    # f32 matmul path: tight check against the pure-JAX reference.
    y32 = jax.block_until_ready(
        basic_block_forward(x, gamma, beta, conv_w, compute_dtype=jnp.float32))
    assert y32.shape == (N, Cin + Cout, D, H, W), y32.shape
    err32 = float(jnp.max(jnp.abs(y32 - y_ref)))
    assert jnp.allclose(y32, y_ref, atol=2e-3, rtol=2e-3), f"f32 max abs err {err32}"

    # bf16 matmul path (default): looser tolerance for bf16 operand rounding.
    ybf16 = jax.block_until_ready(basic_block_forward(x, gamma, beta, conv_w))
    errbf = float(jnp.max(jnp.abs(ybf16 - y_ref)))
    assert jnp.allclose(ybf16, y_ref, atol=5e-2, rtol=5e-2), f"bf16 max abs err {errbf}"

    print("KERNEL_OK")
</pallas_src>

<mosaic_0001>
module attributes {stable_mosaic.version = 11 : i64} {
  func.func @bn_relu_conv3d_kernel(%arg0: i32, %arg1: i32, %arg2: memref<1x8x256xf32, #tpu.memory_space<vmem>>, %arg3: memref<1x8x256xf32, #tpu.memory_space<vmem>>, %arg4: memref<1x256xf32, #tpu.memory_space<vmem>>, %arg5: memref<1x256xf32, #tpu.memory_space<vmem>>, %arg6: memref<8x216xf32, #tpu.memory_space<vmem>>, %arg7: memref<8x1xf32, #tpu.memory_space<vmem>>, %arg8: memref<8x1xf32, #tpu.memory_space<vmem>>, %arg9: memref<1x8x256xf32, #tpu.memory_space<vmem>>, %arg10: memref<216x256xf32, #tpu.memory_space<vmem>>) attributes {dimension_semantics = [#tpu.dimension_semantics<parallel>, #tpu.dimension_semantics<parallel>], iteration_bounds = array<i64: 2, 4>, scalar_prefetch = 0 : i64, scratch_operands = 1 : i64, tpu.core_type = #tpu.core_type<tc>, window_params = [{transform_indices = @transform_0, window_bounds = array<i64: 1, 8, 256>}, {transform_indices = @transform_1, window_bounds = array<i64: 1, 8, 256>}, {transform_indices = @transform_2, window_bounds = array<i64: 1, 256>}, {transform_indices = @transform_3, window_bounds = array<i64: 1, 256>}, {pipeline_mode = #tpu.pipeline_mode<synchronous>, transform_indices = @transform_4, window_bounds = array<i64: 8, 216>}, {pipeline_mode = #tpu.pipeline_mode<synchronous>, transform_indices = @transform_5, window_bounds = array<i64: 8, 1>}, {pipeline_mode = #tpu.pipeline_mode<synchronous>, transform_indices = @transform_6, window_bounds = array<i64: 8, 1>}, {transform_indices = @transform_7, window_bounds = array<i64: 1, 8, 256>}]} {
    %c0 = arith.constant 0 : index
    %c0_0 = arith.constant 0 : index
    %c0_1 = arith.constant 0 : index
    %0 = vector.load %arg2[%c0, %c0_0, %c0_1] : memref<1x8x256xf32, #tpu.memory_space<vmem>>, vector<1x8x256xf32>
    %1 = vector.shape_cast %0 : vector<1x8x256xf32> to vector<8x256xf32>
    %c0_2 = arith.constant 0 : index
    %c0_3 = arith.constant 0 : index
    %c0_4 = arith.constant 0 : index
    %2 = vector.load %arg3[%c0_2, %c0_3, %c0_4] : memref<1x8x256xf32, #tpu.memory_space<vmem>>, vector<1x8x256xf32>
    %3 = vector.shape_cast %2 : vector<1x8x256xf32> to vector<8x256xf32>
    %4 = tpu.concatenate %1, %3 in 1 : vector<8x256xf32>, vector<8x256xf32> -> vector<8x512xf32>
    %c0_5 = arith.constant 0 : index
    %c0_6 = arith.constant 0 : index
    %5 = vector.load %arg4[%c0_5, %c0_6] : memref<1x256xf32, #tpu.memory_space<vmem>>, vector<1x256xf32>
    %c0_7 = arith.constant 0 : index
    %c0_8 = arith.constant 0 : index
    %6 = vector.load %arg5[%c0_7, %c0_8] : memref<1x256xf32, #tpu.memory_space<vmem>>, vector<1x256xf32>
    %7 = tpu.concatenate %5, %6 in 1 : vector<1x256xf32>, vector<1x256xf32> -> vector<1x512xf32>
    %c0_9 = arith.constant 0 : index
    %c0_10 = arith.constant 0 : index
    %8 = vector.load %arg7[%c0_9, %c0_10] : memref<8x1xf32, #tpu.memory_space<vmem>>, vector<8x1xf32>
    %9 = vector.broadcast %8 : vector<8x1xf32> to vector<8x512xf32>
    %10 = arith.mulf %4, %9 : vector<8x512xf32>
    %c0_11 = arith.constant 0 : index
    %c0_12 = arith.constant 0 : index
    %11 = vector.load %arg8[%c0_11, %c0_12] : memref<8x1xf32, #tpu.memory_space<vmem>>, vector<8x1xf32>
    %12 = vector.broadcast %11 : vector<8x1xf32> to vector<8x512xf32>
    %13 = arith.addf %10, %12 : vector<8x512xf32>
    %cst = arith.constant 0.000000e+00 : f32
    %14 = vector.broadcast %cst : f32 to vector<8x512xf32>
    %15 = arith.maximumf %13, %14 : vector<8x512xf32>
    %16 = vector.broadcast %7 : vector<1x512xf32> to vector<8x512xf32>
    %17 = arith.mulf %15, %16 : vector<8x512xf32>
    %18 = vector.extract_strided_slice %17 {offsets = [0, 0], sizes = [8, 256], strides = [1, 1]} : vector<8x512xf32> to vector<8x256xf32>
    %c0_13 = arith.constant 0 : index
    %c0_14 = arith.constant 0 : index
    %19 = vector.load %arg10[%c0_13, %c0_14] : memref<216x256xf32, #tpu.memory_space<vmem>>, vector<8x256xf32>
    tpu.vector_store %arg10[%c0_13, %c0_14], %18 {strides = array<i32>} : memref<216x256xf32, #tpu.memory_space<vmem>>, vector<8x256xf32>,
    %20 = vector.extract_strided_slice %17 {offsets = [0, 1], sizes = [8, 256], strides = [1, 1]} : vector<8x512xf32> to vector<8x256xf32>
    %c8 = arith.constant 8 : index
    %c0_15 = arith.constant 0 : index
    %21 = vector.load %arg10[%c8, %c0_15] : memref<216x256xf32, #tpu.memory_space<vmem>>, vector<8x256xf32>
    tpu.vector_store %arg10[%c8, %c0_15], %20 {strides = array<i32>} : memref<216x256xf32, #tpu.memory_space<vmem>>, vector<8x256xf32>,
    %22 = vector.extract_strided_slice %17 {offsets = [0, 2], sizes = [8, 256], strides = [1, 1]} : vector<8x512xf32> to vector<8x256xf32>
    %c16 = arith.constant 16 : index
    %c0_16 = arith.constant 0 : index
    %23 = vector.load %arg10[%c16, %c0_16] : memref<216x256xf32, #tpu.memory_space<vmem>>, vector<8x256xf32>
    tpu.vector_store %arg10[%c16, %c0_16], %22 {strides = array<i32>} : memref<216x256xf32, #tpu.memory_space<vmem>>, vector<8x256xf32>,
    %24 = vector.extract_strided_slice %17 {offsets = [0, 10], sizes = [8, 256], strides = [1, 1]} : vector<8x512xf32> to vector<8x256xf32>
    %c24 = arith.constant 24 : index
    %c0_17 = arith.constant 0 : index
    %25 = vector.load %arg10[%c24, %c0_17] : memref<216x256xf32, #tpu.memory_space<vmem>>, vector<8x256xf32>
    tpu.vector_store %arg10[%c24, %c0_17], %24 {strides = array<i32>} : memref<216x256xf32, #tpu.memory_space<vmem>>, vector<8x256xf32>,
    %26 = vector.extract_strided_slice %17 {offsets = [0, 11], sizes = [8, 256], strides = [1, 1]} : vector<8x512xf32> to vector<8x256xf32>
    %c32 = arith.constant 32 : index
    %c0_18 = arith.constant 0 : index
    %27 = vector.load %arg10[%c32, %c0_18] : memref<216x256xf32, #tpu.memory_space<vmem>>, vector<8x256xf32>
    tpu.vector_store %arg10[%c32, %c0_18], %26 {strides = array<i32>} : memref<216x256xf32, #tpu.memory_space<vmem>>, vector<8x256xf32>,
    %28 = vector.extract_strided_slice %17 {offsets = [0, 12], sizes = [8, 256], strides = [1, 1]} : vector<8x512xf32> to vector<8x256xf32>
    %c40 = arith.constant 40 : index
    %c0_19 = arith.constant 0 : index
    %29 = vector.load %arg10[%c40, %c0_19] : memref<216x256xf32, #tpu.memory_space<vmem>>, vector<8x256xf32>
    tpu.vector_store %arg10[%c40, %c0_19], %28 {strides = array<i32>} : memref<216x256xf32, #tpu.memory_space<vmem>>, vector<8x256xf32>,
    %30 = vector.extract_strided_slice %17 {offsets = [0, 20], sizes = [8, 256], strides = [1, 1]} : vector<8x512xf32> to vector<8x256xf32>
    %c48 = arith.constant 48 : index
    %c0_20 = arith.constant 0 : index
    %31 = vector.load %arg10[%c48, %c0_20] : memref<216x256xf32, #tpu.memory_space<vmem>>, vector<8x256xf32>
    tpu.vector_store %arg10[%c48, %c0_20], %30 {strides = array<i32>} : memref<216x256xf32, #tpu.memory_space<vmem>>, vector<8x256xf32>,
    %32 = vector.extract_strided_slice %17 {offsets = [0, 21], sizes = [8, 256], strides = [1, 1]} : vector<8x512xf32> to vector<8x256xf32>
    %c56 = arith.constant 56 : index
    %c0_21 = arith.constant 0 : index
    %33 = vector.load %arg10[%c56, %c0_21] : memref<216x256xf32, #tpu.memory_space<vmem>>, vector<8x256xf32>
    tpu.vector_store %arg10[%c56, %c0_21], %32 {strides = array<i32>} : memref<216x256xf32, #tpu.memory_space<vmem>>, vector<8x256xf32>,
    %34 = vector.extract_strided_slice %17 {offsets = [0, 22], sizes = [8, 256], strides = [1, 1]} : vector<8x512xf32> to vector<8x256xf32>
    %c64 = arith.constant 64 : index
    %c0_22 = arith.constant 0 : index
    %35 = vector.load %arg10[%c64, %c0_22] : memref<216x256xf32, #tpu.memory_space<vmem>>, vector<8x256xf32>
    tpu.vector_store %arg10[%c64, %c0_22], %34 {strides = array<i32>} : memref<216x256xf32, #tpu.memory_space<vmem>>, vector<8x256xf32>,
    %36 = vector.extract_strided_slice %17 {offsets = [0, 100], sizes = [8, 256], strides = [1, 1]} : vector<8x512xf32> to vector<8x256xf32>
    %c72 = arith.constant 72 : index
    %c0_23 = arith.constant 0 : index
    %37 = vector.load %arg10[%c72, %c0_23] : memref<216x256xf32, #tpu.memory_space<vmem>>, vector<8x256xf32>
    tpu.vector_store %arg10[%c72, %c0_23], %36 {strides = array<i32>} : memref<216x256xf32, #tpu.memory_space<vmem>>, vector<8x256xf32>,
    %38 = vector.extract_strided_slice %17 {offsets = [0, 101], sizes = [8, 256], strides = [1, 1]} : vector<8x512xf32> to vector<8x256xf32>
    %c80 = arith.constant 80 : index
    %c0_24 = arith.constant 0 : index
    %39 = vector.load %arg10[%c80, %c0_24] : memref<216x256xf32, #tpu.memory_space<vmem>>, vector<8x256xf32>
    tpu.vector_store %arg10[%c80, %c0_24], %38 {strides = array<i32>} : memref<216x256xf32, #tpu.memory_space<vmem>>, vector<8x256xf32>,
    %40 = vector.extract_strided_slice %17 {offsets = [0, 102], sizes = [8, 256], strides = [1, 1]} : vector<8x512xf32> to vector<8x256xf32>
    %c88 = arith.constant 88 : index
    %c0_25 = arith.constant 0 : index
    %41 = vector.load %arg10[%c88, %c0_25] : memref<216x256xf32, #tpu.memory_space<vmem>>, vector<8x256xf32>
    tpu.vector_store %arg10[%c88, %c0_25], %40 {strides = array<i32>} : memref<216x256xf32, #tpu.memory_space<vmem>>, vector<8x256xf32>,
    %42 = vector.extract_strided_slice %17 {offsets = [0, 110], sizes = [8, 256], strides = [1, 1]} : vector<8x512xf32> to vector<8x256xf32>
    %c96 = arith.constant 96 : index
    %c0_26 = arith.constant 0 : index
    %43 = vector.load %arg10[%c96, %c0_26] : memref<216x256xf32, #tpu.memory_space<vmem>>, vector<8x256xf32>
    tpu.vector_store %arg10[%c96, %c0_26], %42 {strides = array<i32>} : memref<216x256xf32, #tpu.memory_space<vmem>>, vector<8x256xf32>,
    %44 = vector.extract_strided_slice %17 {offsets = [0, 111], sizes = [8, 256], strides = [1, 1]} : vector<8x512xf32> to vector<8x256xf32>
    %c104 = arith.constant 104 : index
    %c0_27 = arith.constant 0 : index
    %45 = vector.load %arg10[%c104, %c0_27] : memref<216x256xf32, #tpu.memory_space<vmem>>, vector<8x256xf32>
    tpu.vector_store %arg10[%c104, %c0_27], %44 {strides = array<i32>} : memref<216x256xf32, #tpu.memory_space<vmem>>, vector<8x256xf32>,
    %46 = vector.extract_strided_slice %17 {offsets = [0, 112], sizes = [8, 256], strides = [1, 1]} : vector<8x512xf32> to vector<8x256xf32>
    %c112 = arith.constant 112 : index
    %c0_28 = arith.constant 0 : index
    %47 = vector.load %arg10[%c112, %c0_28] : memref<216x256xf32, #tpu.memory_space<vmem>>, vector<8x256xf32>
    tpu.vector_store %arg10[%c112, %c0_28], %46 {strides = array<i32>} : memref<216x256xf32, #tpu.memory_space<vmem>>, vector<8x256xf32>,
    %48 = vector.extract_strided_slice %17 {offsets = [0, 120], sizes = [8, 256], strides = [1, 1]} : vector<8x512xf32> to vector<8x256xf32>
    %c120 = arith.constant 120 : index
    %c0_29 = arith.constant 0 : index
    %49 = vector.load %arg10[%c120, %c0_29] : memref<216x256xf32, #tpu.memory_space<vmem>>, vector<8x256xf32>
    tpu.vector_store %arg10[%c120, %c0_29], %48 {strides = array<i32>} : memref<216x256xf32, #tpu.memory_space<vmem>>, vector<8x256xf32>,
    %50 = vector.extract_strided_slice %17 {offsets = [0, 121], sizes = [8, 256], strides = [1, 1]} : vector<8x512xf32> to vector<8x256xf32>
    %c128 = arith.constant 128 : index
    %c0_30 = arith.constant 0 : index
    %51 = vector.load %arg10[%c128, %c0_30] : memref<216x256xf32, #tpu.memory_space<vmem>>, vector<8x256xf32>
    tpu.vector_store %arg10[%c128, %c0_30], %50 {strides = array<i32>} : memref<216x256xf32, #tpu.memory_space<vmem>>, vector<8x256xf32>,
    %52 = vector.extract_strided_slice %17 {offsets = [0, 122], sizes = [8, 256], strides = [1, 1]} : vector<8x512xf32> to vector<8x256xf32>
    %c136 = arith.constant 136 : index
    %c0_31 = arith.constant 0 : index
    %53 = vector.load %arg10[%c136, %c0_31] : memref<216x256xf32, #tpu.memory_space<vmem>>, vector<8x256xf32>
    tpu.vector_store %arg10[%c136, %c0_31], %52 {strides = array<i32>} : memref<216x256xf32, #tpu.memory_space<vmem>>, vector<8x256xf32>,
    %54 = vector.extract_strided_slice %17 {offsets = [0, 200], sizes = [8, 256], strides = [1, 1]} : vector<8x512xf32> to vector<8x256xf32>
    %c144 = arith.constant 144 : index
    %c0_32 = arith.constant 0 : index
    %55 = vector.load %arg10[%c144, %c0_32] : memref<216x256xf32, #tpu.memory_space<vmem>>, vector<8x256xf32>
    tpu.vector_store %arg10[%c144, %c0_32], %54 {strides = array<i32>} : memref<216x256xf32, #tpu.memory_space<vmem>>, vector<8x256xf32>,
    %56 = vector.extract_strided_slice %17 {offsets = [0, 201], sizes = [8, 256], strides = [1, 1]} : vector<8x512xf32> to vector<8x256xf32>
    %c152 = arith.constant 152 : index
    %c0_33 = arith.constant 0 : index
    %57 = vector.load %arg10[%c152, %c0_33] : memref<216x256xf32, #tpu.memory_space<vmem>>, vector<8x256xf32>
    tpu.vector_store %arg10[%c152, %c0_33], %56 {strides = array<i32>} : memref<216x256xf32, #tpu.memory_space<vmem>>, vector<8x256xf32>,
    %58 = vector.extract_strided_slice %17 {offsets = [0, 202], sizes = [8, 256], strides = [1, 1]} : vector<8x512xf32> to vector<8x256xf32>
    %c160 = arith.constant 160 : index
    %c0_34 = arith.constant 0 : index
    %59 = vector.load %arg10[%c160, %c0_34] : memref<216x256xf32, #tpu.memory_space<vmem>>, vector<8x256xf32>
    tpu.vector_store %arg10[%c160, %c0_34], %58 {strides = array<i32>} : memref<216x256xf32, #tpu.memory_space<vmem>>, vector<8x256xf32>,
    %60 = vector.extract_strided_slice %17 {offsets = [0, 210], sizes = [8, 256], strides = [1, 1]} : vector<8x512xf32> to vector<8x256xf32>
    %c168 = arith.constant 168 : index
    %c0_35 = arith.constant 0 : index
    %61 = vector.load %arg10[%c168, %c0_35] : memref<216x256xf32, #tpu.memory_space<vmem>>, vector<8x256xf32>
    tpu.vector_store %arg10[%c168, %c0_35], %60 {strides = array<i32>} : memref<216x256xf32, #tpu.memory_space<vmem>>, vector<8x256xf32>,
    %62 = vector.extract_strided_slice %17 {offsets = [0, 211], sizes = [8, 256], strides = [1, 1]} : vector<8x512xf32> to vector<8x256xf32>
    %c176 = arith.constant 176 : index
    %c0_36 = arith.constant 0 : index
    %63 = vector.load %arg10[%c176, %c0_36] : memref<216x256xf32, #tpu.memory_space<vmem>>, vector<8x256xf32>
    tpu.vector_store %arg10[%c176, %c0_36], %62 {strides = array<i32>} : memref<216x256xf32, #tpu.memory_space<vmem>>, vector<8x256xf32>,
    %64 = vector.extract_strided_slice %17 {offsets = [0, 212], sizes = [8, 256], strides = [1, 1]} : vector<8x512xf32> to vector<8x256xf32>
    %c184 = arith.constant 184 : index
    %c0_37 = arith.constant 0 : index
    %65 = vector.load %arg10[%c184, %c0_37] : memref<216x256xf32, #tpu.memory_space<vmem>>, vector<8x256xf32>
    tpu.vector_store %arg10[%c184, %c0_37], %64 {strides = array<i32>} : memref<216x256xf32, #tpu.memory_space<vmem>>, vector<8x256xf32>,
    %66 = vector.extract_strided_slice %17 {offsets = [0, 220], sizes = [8, 256], strides = [1, 1]} : vector<8x512xf32> to vector<8x256xf32>
    %c192 = arith.constant 192 : index
    %c0_38 = arith.constant 0 : index
    %67 = vector.load %arg10[%c192, %c0_38] : memref<216x256xf32, #tpu.memory_space<vmem>>, vector<8x256xf32>
    tpu.vector_store %arg10[%c192, %c0_38], %66 {strides = array<i32>} : memref<216x256xf32, #tpu.memory_space<vmem>>, vector<8x256xf32>,
    %68 = vector.extract_strided_slice %17 {offsets = [0, 221], sizes = [8, 256], strides = [1, 1]} : vector<8x512xf32> to vector<8x256xf32>
    %c200 = arith.constant 200 : index
    %c0_39 = arith.constant 0 : index
    %69 = vector.load %arg10[%c200, %c0_39] : memref<216x256xf32, #tpu.memory_space<vmem>>, vector<8x256xf32>
    tpu.vector_store %arg10[%c200, %c0_39], %68 {strides = array<i32>} : memref<216x256xf32, #tpu.memory_space<vmem>>, vector<8x256xf32>,
    %70 = vector.extract_strided_slice %17 {offsets = [0, 222], sizes = [8, 256], strides = [1, 1]} : vector<8x512xf32> to vector<8x256xf32>
    %c208 = arith.constant 208 : index
    %c0_40 = arith.constant 0 : index
    %71 = vector.load %arg10[%c208, %c0_40] : memref<216x256xf32, #tpu.memory_space<vmem>>, vector<8x256xf32>
    tpu.vector_store %arg10[%c208, %c0_40], %70 {strides = array<i32>} : memref<216x256xf32, #tpu.memory_space<vmem>>, vector<8x256xf32>,
    %c0_41 = arith.constant 0 : index
    %c0_42 = arith.constant 0 : index
    %72 = vector.load %arg10[%c0_41, %c0_42] : memref<216x256xf32, #tpu.memory_space<vmem>>, vector<216x256xf32>
    %c0_43 = arith.constant 0 : index
    %c0_44 = arith.constant 0 : index
    %73 = vector.load %arg6[%c0_43, %c0_44] : memref<8x216xf32, #tpu.memory_space<vmem>>, vector<8x216xf32>
    %cst_45 = arith.constant dense<0.000000e+00> : vector<8x256xf32>
    %74 = tpu.matmul %73, %72, %cst_45 {dimension_numbers = #tpu.dot_dimension_numbers<[1], [0], [0], [1], [0, 0, 1, 1], [], []>} : vector<8x216xf32>, vector<216x256xf32>, vector<8x256xf32> -> vector<8x256xf32>
    %c0_46 = arith.constant 0 : index
    %c0_47 = arith.constant 0 : index
    %c0_48 = arith.constant 0 : index
    %75 = vector.load %arg9[%c0_46, %c0_47, %c0_48] : memref<1x8x256xf32, #tpu.memory_space<vmem>>, vector<1x8x256xf32>
    %76 = vector.shape_cast %75 : vector<1x8x256xf32> to vector<8x256xf32>
    %77 = vector.shape_cast %74 : vector<8x256xf32> to vector<1x8x256xf32>
    tpu.vector_store %arg9[%c0_46, %c0_47, %c0_48], %77 {strides = array<i32>} : memref<1x8x256xf32, #tpu.memory_space<vmem>>, vector<1x8x256xf32>,
    return
  }
  func.func @transform_0(%arg0: i32, %arg1: i32) -> (i32, i32, i32) {
    %c0_i32 = arith.constant 0 : i32
    %c0_i32_0 = arith.constant 0 : i32
    return %arg0, %c0_i32, %arg1 : i32, i32, i32
  }
  func.func @transform_1(%arg0: i32, %arg1: i32) -> (i32, i32, i32) {
    %c1_i32 = arith.constant 1 : i32
    %0 = arith.addi %arg1, %c1_i32 : i32
    %c0_i32 = arith.constant 0 : i32
    %c0_i32_0 = arith.constant 0 : i32
    return %arg0, %c0_i32, %0 : i32, i32, i32
  }
  func.func @transform_2(%arg0: i32, %arg1: i32) -> (i32, i32) {
    %c0_i32 = arith.constant 0 : i32
    %c0_i32_0 = arith.constant 0 : i32
    return %c0_i32, %arg1 : i32, i32
  }
  func.func @transform_3(%arg0: i32, %arg1: i32) -> (i32, i32) {
    %c1_i32 = arith.constant 1 : i32
    %0 = arith.addi %arg1, %c1_i32 : i32
    %c0_i32 = arith.constant 0 : i32
    %c0_i32_0 = arith.constant 0 : i32
    return %c0_i32, %0 : i32, i32
  }
  func.func @transform_4(%arg0: i32, %arg1: i32) -> (i32, i32) {
    %c0_i32 = arith.constant 0 : i32
    %c0_i32_0 = arith.constant 0 : i32
    %c0_i32_1 = arith.constant 0 : i32
    return %c0_i32, %c0_i32_0 : i32, i32
  }
  func.func @transform_5(%arg0: i32, %arg1: i32) -> (i32, i32) {
    %c0_i32 = arith.constant 0 : i32
    %c0_i32_0 = arith.constant 0 : i32
    %c0_i32_1 = arith.constant 0 : i32
    return %c0_i32, %c0_i32_0 : i32, i32
  }
  func.func @transform_6(%arg0: i32, %arg1: i32) -> (i32, i32) {
    %c0_i32 = arith.constant 0 : i32
    %c0_i32_0 = arith.constant 0 : i32
    %c0_i32_1 = arith.constant 0 : i32
    return %c0_i32, %c0_i32_0 : i32, i32
  }
  func.func @transform_7(%arg0: i32, %arg1: i32) -> (i32, i32, i32) {
    %c0_i32 = arith.constant 0 : i32
    %c0_i32_0 = arith.constant 0 : i32
    return %arg0, %c0_i32, %arg1 : i32, i32, i32
  }
}

</mosaic_0001>

<bundles_post_ra>
// kernel: tpu_custom_call.1
= control target key start
LH: loop header
LB: loop body
LE: loop exit
PB: predicated region body
PF: predicated region fallthrough
CT: control target
= control target key end

     0   :  { %s2457_s0 = inlined_call_operand.hbm [shape: f32[2,8,1280], index: 0, kind: input, shape index: {}]   ;;  %s2458_s1 = inlined_call_operand.hbm [shape: f32[2,8,1280], index: 1, kind: input, shape index: {}]   ;;  %s2459_s2 = inlined_call_operand.hbm [shape: f32[1,1280], index: 2, kind: input, shape index: {}]   ;;  %s2460_s3 = inlined_call_operand.hbm [shape: f32[1,1280], index: 3, kind: input, shape index: {}]   ;;  %s2461_s4 = inlined_call_operand.vmem [shape: f32[8,216], index: 4, kind: input, shape index: {}]   ;;  %s2462_s5 = inlined_call_operand.vmem [shape: f32[8,1], index: 5, kind: input, shape index: {}]   ;;  %s2463_s6 = inlined_call_operand.vmem [shape: f32[8,1], index: 6, kind: input, shape index: {}]   ;;  %s2464_s7 = inlined_call_operand.hbm [shape: f32[2,8,1024], index: 7, kind: output, shape index: {}]  }
   0x1   :  { %2478 = sst [smem:[#allocation29_spill]] %s2458_s1 }
   0x2   :  { %2479 = sst [smem:[#allocation30_spill]] %s2460_s3 }
   0x3   :  { %2480 = sst [smem:[#allocation31_spill]] %s2461_s4 }
   0x4   :  { %2481 = sst [smem:[#allocation32_spill]] %s2462_s5 }
   0x5   :  { %2482 = sst [smem:[#allocation33_spill]] %s2463_s6 }
   0x6   :  { %2483 = sst [smem:[#allocation34_spill]] %s2464_s7 }
   0x7   :  { %12 = vsyncpa [#allocation4], 0 }
   0x8   :  { %14 = vsyncpa [#allocation4 + $0x1], 0 }
   0x9   :  { %15 = vsyncpa [#allocation7], 0 }
   0xa   :  { %17 = vsyncpa [#allocation7 + $0x1], 0 }
   0xb   :  { %18 = vsyncpa [#allocation10], 0 }
   0xc   :  { %20 = vsyncpa [#allocation10 + $0x1], 0 }
   0xd   :  { %21 = vsyncpa [#allocation5], 0 }
   0xe   :  { %23 = vsyncpa [#allocation5 + $0x1], 0  ;;  %s1881_s24 = smov 0   ;;  %s1883_s25 = smov 0  }
   0xf   :  { %s1885_s26 = smov 0   ;;  %s1887_s27 = smov 0  }
  0x10   :  { %s1889_s28 = smov 0   ;;  %s1891_s29 = smov 0  }
  0x11   :  { %s1893_s30 = smov 0   ;;  %s1895_s8 = smov 0  }
  0x12   :  { %s1897_s9 = smov 0   ;;  %s1899_s10 = smov 0  }
  0x13   :  { %s1901_s11 = smov 0   ;;  %s1903_s12 = smov 0  }
  0x14   :  { %s1905_s13 = smov 0   ;;  %s1907_s14 = smov 0  }
  0x15   :  { %s1909_s15 = smov 0   ;;  %s1911_s16 = smov 0  }
  0x16   :  { %s1913_s17 = smov 0  }
  0x17 LB: > { %2484 = sst [smem:[#allocation17_spill]] %s1776_s8  ;;  %s1967_s18 = sadd.s32 4294967295, %s1812_s17   ;;  %s1812_s17 = sphi %s1913_s17, %s29_s17   ;;  %s1808_s16 = sphi %s1911_s16, %s2529_s16   ;;  %s1804_s15 = sphi %s1909_s15, %s2528_s15   ;;  %s1800_s14 = sphi %s1907_s14, %s2527_s14   ;;  %s1796_s13 = sphi %s1905_s13, %s2526_s13   ;;  %s1792_s12 = sphi %s1903_s12, %s2525_s12   ;;  %s1788_s11 = sphi %s1901_s11, %s2537_s11   ;;  %s1784_s10 = sphi %s1899_s10, %s2536_s10   ;;  %s1780_s9 = sphi %s1897_s9, %s2523_s9   ;;  %s1776_s8 = sphi %s1895_s8, %s2522_s8   ;;  %s1772_s30 = sphi %s1893_s30, %s2521_s30   ;;  %s1768_s29 = sphi %s1891_s29, %s2535_s29   ;;  %s1764_s28 = sphi %s1889_s28, %s2534_s28   ;;  %s1760_s27 = sphi %s1887_s27, %s2533_s27   ;;  %s1756_s26 = sphi %s1885_s26, %s2532_s26   ;;  %s1752_s25 = sphi %s1883_s25, %s2531_s25   ;;  %s1748_s24 = sphi %s1881_s24, %s2530_s24  }
  0x18   : > { %2485 = sst [smem:[#allocation18_spill]] %s1780_s9  ;;  %s38_s19 = sadd.s32 1, %s1804_s15 }
  0x19   : > { %2486 = sst [smem:[#allocation19_spill]] %s1792_s12  ;;  %p39_p0 = scmp.ge.s32.totalorder %s38_s19, 4 }
  0x1a   : > { %2487 = sst [smem:[#allocation20_spill]] %s1796_s13  ;;  %s41_s20 = sadd.s32 1, %s1808_s16 }
  0x1b   : > { %2488 = sst [smem:[#allocation21_spill]] %s1800_s14  ;;  %p58_p1 = scmp.eq.s32.totalorder %s1812_s17, 0 }
  0x1c   : > { %2489 = sst [smem:[#allocation22_spill]] %s1804_s15  ;;  %p2476_p2 = scmp.eq.s32.totalorder %s1967_s18, 0 }
  0x1d   : > { %2490 = sst [smem:[#allocation23_spill]] %s1808_s16  ;;  %s2539_s20 = smov (!%p39_p0, %s41_s20), %s1808_s16 }
  0x1e   : > { %s1973_s21 = scalar_select %p39_p0, 0, %s38_s19  }
  0x1f   : > { %p43_p3 = scmp.ge.s32.totalorder %s2539_s20, 2  ;;  %s80_s14 = sadd.s32 1, %s1780_s9 }
  0x20   : > { %2491 = sst [smem:[#allocation24_spill]] %s1973_s21  ;;  %s1978_s22 = ssub.s32 %s1804_s15, %s1973_s21 }
  0x21   : > { %s74_s23 = sadd.s32 1, %s1973_s21  ;;  %p87_p4 = scmp.ne.s32.totalorder %s1780_s9, %s1776_s8 }
  0x22   : > { %s1981_s7 = ssub.s32 %s38_s19, %s74_s23  ;;  %s2541_s20 = smov (%p43_p3, %s2539_s20), 0 }
  0x23   : > { %2492 = sst [smem:[#allocation25_spill]] %s2541_s20  ;;  %p1990_p5 = por %p87_p4, %p58_p1 }
  0x24   : > { %p93_p6 = scmp.ne.s32.totalorder %s1776_s8, %s1772_s30  ;;  %s45_s21 = ssub.s32 %s1808_s16, %s2541_s20 }
  0x25   : > { %s47_s19 = sor.u32 %s1978_s22, %s45_s21  ;;  %s77_s23 = sor.u32 %s1981_s7, %s45_s21 }
  0x26   : > { %p2001_p8 = scmp.eq.s32.totalorder %s47_s19, 0  ;;  %p78_p9 = scmp.eq.s32.totalorder %s77_s23, 0 }
  0x27   : > { %p2007_p10 = por %p93_p6, %p2476_p2  ;;  %p1214_p12 = scmp.lt.s32.totalorder %s1812_s17, 8 }
  0x28   : > { %s2013_s5 = scalar_select %p78_p9, %s1780_s9, %s80_s14  }
  0x29   : > { %s2495_s6 = scalar_select %p2007_p10, 1, 0 }
  0x2a   : > { %2497 = sst [smem:[#allocation27_spill]] %s2013_s5  ;;  %s2017_s30 = sshll.u32 %s1804_s15, 1 }
  0x2b   : > { %2496 = sst [smem:[#allocation26_spill]] %s2495_s6  ;;  %s1186_s21 = smul.u32 10, %s1808_s16 }
  0x2c   : > { %s293_s19 = sand.u32 1, %s1812_s17   ;;  %s295_s20 = sand.u32 1, %s1780_s9  }
  0x2d   : > { %s2023_s23 = sadd.s32 %s1186_s21, %s2017_s30  ;;  %s1165_s6 = sshll.u32 %s295_s20, 4 }
  0x2e   : > { %s1164_s8 = sshll.u32 %s2023_s23, 3  ;;  %s2498_s1 = sld [smem:[#allocation29_spill]] }
  0x2f   : > { %s297_s16 = scalar_lea.vmem [#allocation6], %s1165_s6  ;;  %p1201_p13 = pnand %p1214_p12, %p1990_p5 }
  0x30   : > { %s309_s21 = sshll.u32 %s297_s16, 4  ;;  %p1172_p0 = scmp.ge.s32.totalorder %s1812_s17, 1  ;;  %s310_s21 = int_to_ptr.vmem [resolvable:$true] %s309_s21 }
  0x31   : > { %p353_p3 = scmp.lt.s32.totalorder %s1812_s17, 9  ;;  %s2035_s5 = scalar_lea.sflag [#allocation7], %s293_s19 }
  0x32   : > { %s1159_s6 = sadd.s32 4294967294, %s1812_s17   ;;  %p57_p6 = scmp.ne.s32.totalorder %s1792_s12, %s1788_s11 }
  0x33   : > { %p2038_p4 = pnand %p1172_p0, %p353_p3  ;;  %p63_p9 = scmp.ne.s32.totalorder %s1788_s11, %s1784_s10 }
  0x34   : > { %s1045_s3 = scalar_lea.hbm %s2498_s1, %s1164_s8  ;;  %p236_p5 = scmp.eq.s32.totalorder %s1967_s18, 7 }
  0x35   : > { %s1046_s15 = scalar_lea.hbm %s1045_s3, 16  ;;  %p242_p11 = scmp.eq.s32.totalorder %s1159_s6, 7 }
  0x36   : > { %s307_s9 = sshll.u32 %s1046_s15, 4  ;;  %s50_s15 = sadd.s32 1, %s1792_s12  ;;  %s308_s9 = int_to_ptr.hbm [resolvable:$true] %s307_s9 }
  0x37   : > { %1203 = dma.hbm_to_vmem [thread:$0]  (!%p1201_p13), %s308_s9, 256, %s310_s21, %s2035_s5  }
  0x38   : > { %s2047_s16 = scalar_select %p2001_p8, %s1792_s12, %s50_s15  }
  0x39   : > { %p59_p7 = por %p58_p1, %p57_p6  ;;  %p2058_p13 = por %p2476_p2, %p63_p9 }
  0x3a   : > { %2500 = sst [smem:[#allocation28_spill]] %s2047_s16  ;;  %p2062_p0 = por %p236_p5, %p57_p6 }
  0x3b   : > { %p2066_p8 = por %p242_p11, %p63_p9  ;;  %s271_s20 = sand.u32 1, %s1792_s12  }
  0x3c   : > { %s2502_s4 = scalar_select %p2062_p0, 1, 0 }
  0x3d   : > { %s2503_s13 = scalar_select %p2066_p8, 1, 0 }
  0x3e   : > { %s282_s14 = scalar_lea.hbm %s2457_s0, %s1164_s8  ;;  %s1162_s21 = sshll.u32 %s271_s20, 4 }
  0x3f   : > { %s284_s6 = sshll.u32 %s282_s14, 4  ;;  %s275_s15 = scalar_lea.vmem [#allocation3], %s1162_s21  ;;  %s285_s6 = int_to_ptr.hbm [resolvable:$true] %s284_s6 }
  0x40   : > { %s286_s1 = sshll.u32 %s275_s15, 4  ;;  %p1198_p11 = pnand %p1214_p12, %p59_p7  ;;  %s287_s1 = int_to_ptr.vmem [resolvable:$true] %s286_s1 }
  0x41   : > { %s272_s16 = scalar_lea.sflag [#allocation4], %s271_s20  ;;  %s106_s12 = sadd.s32 1, %s1768_s29 }
  0x42   : > { %1200 = dma.hbm_to_vmem [thread:$0]  (!%p1198_p11), %s285_s6, 256, %s287_s1, %s272_s16  }
  0x43   : > { %p2504_p3 = scmp.eq.s32.totalorder %s1978_s22, 0  ;;  %p113_p6 = scmp.ne.s32.totalorder %s1768_s29, %s1764_s28 }
  0x44   : > { %p119_p9 = scmp.ne.s32.totalorder %s1764_s28, %s1760_s27  ;;  %s318_s8 = sand.u32 1, %s1768_s29  }
  0x45   : > { %s2080_s19 = scalar_select %p2504_p3, %s1768_s29, %s106_s12  }
  0x46   : > { %s324_s1 = scalar_lea.hbm %s2459_s2, %s2017_s30  ;;  %p115_p7 = por %p113_p6, %p58_p1 }
  0x47   : > { %p2095_p5 = por %p119_p9, %p2476_p2  ;;  %s1168_s22 = sshll.u32 %s318_s8, 1 }
  0x48   : > { %s326_s27 = sshll.u32 %s324_s1, 4  ;;  %s320_s16 = scalar_lea.vmem [#allocation8], %s1168_s22  ;;  %s327_s27 = int_to_ptr.hbm [resolvable:$true] %s326_s27 }
  0x49   : > { %s328_s20 = sshll.u32 %s320_s16, 4  ;;  %p1204_p11 = pnand %p1214_p12, %p115_p7  ;;  %s329_s20 = int_to_ptr.vmem [resolvable:$true] %s328_s20 }
  0x4a   : > { %s134_s21 = sadd.s32 1, %s1756_s26  ;;  %p141_p3 = scmp.ne.s32.totalorder %s1756_s26, %s1752_s25 }
  0x4b   : > { %1206 = dma.hbm_to_vmem [thread:$0]  (!%p1204_p11), %s327_s27, 32, %s329_s20, %s2035_s5  }
  0x4c   : > { %p2506_p6 = scmp.eq.s32.totalorder %s1981_s7, 0  ;;  %p143_p9 = por %p141_p3, %p58_p1 }
  0x4d   : > { %p147_p2 = scmp.ne.s32.totalorder %s1752_s25, %s1748_s24  ;;  %s335_s15 = sand.u32 1, %s1756_s26  }
  0x4e   : > { %s2108_s6 = scalar_select %p2506_p6, %s1756_s26, %s134_s21  }
  0x4f   : > { %s2507_s14 = sld [smem:[#allocation30_spill]]  ;;  %p2508_p8 = scmp.eq.s32.totalorder %s1967_s18, 0 }
  0x50   : > { %s1170_s5 = sshll.u32 %s335_s15, 1  ;;  %p1207_p1 = pnand %p1214_p12, %p143_p9 }
  0x51   : > { %p2121_p0 = por %p147_p2, %p2508_p8  ;;  %s339_s7 = scalar_lea.vmem [#allocation9], %s1170_s5 }
  0x52   : > { %s348_s20 = sshll.u32 %s339_s7, 4  ;;  %s336_s24 = scalar_lea.sflag [#allocation10], %s335_s15  ;;  %s349_s20 = int_to_ptr.vmem [resolvable:$true] %s348_s20 }
  0x54   : > { %357 = sbr.rel (%p2038_p4) target bundleno = 634 (0x27a), region = 48 }
  0x55   : > { %s1056_s1 = scalar_lea.hbm %s2507_s14, %s2017_s30  ;;  %s2130_s30 = sand.u32 (!%p2038_p4), 1, %s1788_s11  }
  0x56   : > { %s1057_s27 = scalar_lea.hbm %s1056_s1, 2  ;;  %s1173_s21 = sshll.u32 (!%p2038_p4), %s2130_s30, 4 }
  0x57   : > { %s346_s16 = sshll.u32 %s1057_s27, 4  ;;  %s360_s23 = scalar_lea.sflag (!%p2038_p4), [#allocation4], %s2130_s30  ;;  %s347_s16 = int_to_ptr.hbm [resolvable:$true] %s346_s16 }
  0x58   : > { %1209 = dma.hbm_to_vmem [thread:$0]  (!%p1207_p1), %s347_s16, 32, %s349_s20, %s336_s24  }
  0x59   : > { %s363_s8 = scalar_lea.vmem [#allocation3], %s1173_s21 }
  0x5a   : > { %1727 = dma.done.wait (%p2058_p13), %s360_s23, 256  }
  0x5b   : > { %1729 = vsyncadd (%p2058_p13), %s360_s23, 4294967040  ;;  %s2510_s15 = sld [smem:[#allocation17_spill]]  ;;  %s369_s14 = sand.u32 1, %s1967_s18  }
  0x5c   : > { %s370_s27 = scalar_lea.sflag [#allocation7], %s369_s14 }
  0x61   : > { %s371_s1 = sand.u32 1, %s2510_s15  }
  0x62   : > { %s2142_s5 = sshll.u32 %s371_s1, 4 }
  0x63   : > { %s373_s16 = scalar_lea.vmem [#allocation6], %s2142_s5 }
  0x64   : > { %1731 = dma.done.wait (%p2007_p10), %s370_s27, 256  }
  0x65   : > { %1733 = vsyncadd (%p2007_p10), %s370_s27, 4294967040  ;;  %s381_s7 = sand.u32 1, %s1764_s28  }
  0x66   : > { %s1175_s9 = sshll.u32 %s381_s7, 1 }
  0x67   : > { %s383_s20 = scalar_lea.vmem [#allocation8], %s1175_s9 }
  0x68   : > { %1735 = dma.done.wait (%p2095_p5), %s370_s27, 32  }
  0x69   : > { %1737 = vsyncadd (%p2095_p5), %s370_s27, 4294967264  ;;  %s389_s18 = sand.u32 1, %s1752_s25  }
  0x6a   : > { %s1176_s24 = sshll.u32 %s389_s18, 1  ;;  %s390_s23 = scalar_lea.sflag [#allocation10], %s389_s18 }
  0x6b   : > { %s393_s15 = scalar_lea.vmem [#allocation9], %s1176_s24 }
  0x6c   : > { %1739 = dma.done.wait (%p2121_p0), %s390_s23, 32  }
  0x6d   : > { %1741 = vsyncadd (%p2121_p0), %s390_s23, 4294967264  ;;  %v1814_v0 = vmov 0   ;;  %s2512_s1 = sld [smem:[#allocation32_spill]]  ;;  %v451_v4 = vld [vmem:[%s383_s20] sm:$0x3]  ;;  %v448_v6 = vld [vmem:[%s363_s8 + $0x8] sm:$0xff] }
  0x6e   : > { %1379 = vset.pattern.permute.xlu0 %v1814_v0  ;;  %s2513_s7 = sld [smem:[#allocation33_spill]]  ;;  %v447_v5 = vld [vmem:[%s363_s8] sm:$0xff]  ;;  %v454_v7 = vperm.slane %v451_v4, 0  ;;  %v455_v8 = vperm.slane %v451_v4, 1  ;;  %s1815_s22 = smov 118   ;;  %v450_v30 = vld [vmem:[%s373_s16 + $0x8] sm:$0xff] }
  0x6f   : > { %v449_v9 = vld [vmem:[%s373_s16] sm:$0xff]  ;;  %s1816_s8 = smov 126   ;;  %s1817_s9 = smov 127   ;;  %vm519_vm0 = vcmask 1031168   ;;  %vm688_vm1 = vcmask 64512   ;;  %vm506_vm2 = vcmask 1039360  }
  0x70   : > { %v452_v12 = vld [vmem:[%s393_s15] sm:$0x3]  ;;  %v487_v14 = vperm.slane %v454_v7, 0  ;;  %v488_v18 = vperm.slane %v455_v8, 0  ;;  %s1818_s20 = smov 8   ;;  %s1819_s18 = smov 18  }
  0x71   : > { %v459_v19 = vperm.slane %v452_v12, 0  ;;  %s1820_s24 = smov 117   ;;  %v460_v32 = vperm.slane %v452_v12, 1  ;;  %s1821_s23 = smov 16   ;;  %vm532_vm3 = vcmask 965632   ;;  %vm675_vm4 = vcmask 130048  }
  0x72   : > { %s1822_s15 = smov 17   ;;  %s1823_s5 = smov 34   ;;  %vm662_vm5 = vcmask 138240   ;;  %vm649_vm6 = vcmask 146432   ;;  %vm636_vm7 = vcmask 211968   ;;  %vm832_vm8 = vcmask 277504  }
  0x73   : > { %v463_v1 = vld [vmem:[%s2512_s1] sm:$0xff]  ;;  %v489_v25 = vperm.slane %v459_v19, 0  ;;  %v490_v35 = vperm.slane %v460_v32, 0  ;;  %s1824_s16 = smov 26   ;;  %s1825_s3 = smov 35   ;;  %vm819_vm9 = vcmask 285696  }
  0x74   : > { %466 = vperm.xlu0 %1379, %v463_v1   ;;  %v473_v2 = vld [vmem:[%s2513_s7] sm:$0xff]  ;;  %s1826_s14 = smov 27   ;;  %s1827_s1 = smov 36   ;;  %vm623_vm10 = vcmask 220160   ;;  %vm806_vm11 = vcmask 293888   ;;  %vm610_vm12 = vcmask 228352  }
  0x75   : > { %s1828_s12 = smov 28   ;;  %s1829_s27 = smov 44   ;;  %vm793_vm13 = vcmask 359424   ;;  %vm597_vm14 = vcmask 867328   ;;  %vm584_vm15 = vcmask 875520  }
  0x76   : > { %s1830_s7 = smov 106   ;;  %p2518_p10 = scmp.ne.s32.totalorder %s2502_s4, 0 }
  0x7c   : > { %476 = vperm.xlu0 %1379, %v473_v2  }
  0xe6   : > { %v467_v3 = vpop.permute.xlu0 %466 }
  0xe7   : > { %v469_v10 = vmul.f32 %v467_v3, %v447_v5  ;;  %v470_v11 = vmul.f32 %v467_v3, %v448_v6  ;;  %v471_v15 = vmul.f32 %v467_v3, %v449_v9  ;;  %v472_v31 = vmul.f32 %v467_v3, %v450_v30 }
  0xee   : > { %v477_v13 = vpop.permute.xlu0 %476 }
  0xef   : > { %v479_v16 = vadd.f32 %v477_v13, %v469_v10  ;;  %v480_v17 = vadd.f32 %v477_v13, %v470_v11  ;;  %v481_v20 = vadd.f32 %v477_v13, %v471_v15  ;;  %v482_v33 = vadd.f32 %v477_v13, %v472_v31 }
  0xf1   : > { %v483_v21 = vmax.f32 %v479_v16, 0.0  ;;  %v484_v22 = vmax.f32 %v480_v17, 0.0  ;;  %v485_v26 = vmax.f32 %v481_v20, 0.0  ;;  %v486_v34 = vmax.f32 %v482_v33, 0.0 }
  0xf3   : > { %v2167_v23 = vmul.f32 %v487_v14, %v483_v21  ;;  %v2169_v24 = vmul.f32 %v488_v18, %v484_v22  ;;  %v2173_v28 = vmul.f32 %v489_v25, %v485_v26  ;;  %v494_v36 = vmul.f32 %v490_v35, %v486_v34 }
  0xf5   : > { %v1390_v27 = vpack.i.bf16 %v2169_v24, %v2167_v23  ;;  %v2177_v29 = vpack.i.bf16 %v2173_v28, %v2169_v24  ;;  %v1430_v37 = vpack.i.bf16 %v494_v36, %v2173_v28 }
  0xf7   : > { %1391 = vrot.lane.b32.xlu0 %v1390_v27, %s1815_s22  ;;  %1386 = vrot.lane.b32.xlu2 %v1390_v27, %s1816_s8 }
  0xf8   : > { %1381 = vrot.lane.b32.xlu1 %v1390_v27, %s1817_s9 }
  0xff   : > { %1401 = vrot.lane.b32.xlu0 %v2177_v29, %s1818_s20  ;;  %517 = vrot.lane.b32.xlu2 %v2173_v28, %s1816_s8  ;;  %s1832_s8 = smov 116  }
 0x100   : > { %504 = vrot.lane.b32.xlu1 %v2173_v28, %s1817_s9  ;;  %s1833_s9 = smov 108  }
 0x107   : > { %1416 = vrot.lane.b32.xlu0 %v2177_v29, %s1819_s18  ;;  %1396 = vrot.lane.b32.xlu2 %v1390_v27, %s1820_s24 }
 0x108   : > { %530 = vrot.lane.b32.xlu1 %v2173_v28, %s1815_s22  ;;  %s1831_s22 = smov 107  }
 0x10f   : > { %669 = vrot.lane.b32.xlu0 %v2167_v23, %s1821_s23  ;;  %1411 = vrot.lane.b32.xlu2 %v2177_v29, %s1822_s15 }
 0x110   : > { %1406 = vrot.lane.b32.xlu1 %v2177_v29, %s1821_s23  ;;  %s1836_s23 = smov 46  }
 0x117   : > { %1431 = vrot.lane.b32.xlu0 %v1430_v37, %s1823_s5  ;;  %1421 = vrot.lane.b32.xlu2 %v2177_v29, %s1824_s16 }
 0x118   : > { %682 = vrot.lane.b32.xlu1 %v2167_v23, %s1818_s20  ;;  %s1834_s20 = smov 45  }
 0x11f   : > { %1441 = vrot.lane.b32.xlu0 %v1430_v37, %s1825_s3  ;;  %656 = vrot.lane.b32.xlu2 %v2167_v23, %s1822_s15  ;;  %s1837_s15 = smov 55  }
 0x120   : > { %1426 = vrot.lane.b32.xlu1 %v2177_v29, %s1826_s14 }
 0x127   : > { %1451 = vrot.lane.b32.xlu0 %v1430_v37, %s1827_s1  ;;  %643 = vrot.lane.b32.xlu2 %v2167_v23, %s1819_s18  ;;  %s1835_s18 = smov 54  }
 0x128   : > { %1436 = vrot.lane.b32.xlu1 %v2177_v29, %s1828_s12 }
 0x12f   : > { %1461 = vrot.lane.b32.xlu0 %v1430_v37, %s1829_s27  ;;  %630 = vrot.lane.b32.xlu2 %v2167_v23, %s1824_s16  ;;  %s1840_s16 = smov 7  }
 0x130   : > { %1446 = vrot.lane.b32.xlu1 %v2177_v29, %s1830_s7 }
 0x137   : > { %604 = vrot.lane.b32.xlu0 %v2167_v23, %s1828_s12  ;;  %617 = vrot.lane.b32.xlu2 %v2167_v23, %s1826_s14  ;;  %s2515_s12 = sld [smem:[#allocation20_spill]] }
 0x138   : > { %1456 = vrot.lane.b32.xlu1 %v2177_v29, %s1831_s22 }
 0x13f   : > { %1476 = vrot.lane.b32.xlu0 %v2177_v29, %s1832_s8  ;;  %1466 = vrot.lane.b32.xlu2 %v2177_v29, %s1833_s9 }
 0x140   : > { %826 = vrot.lane.b32.xlu1 %v2169_v24, %s1823_s5  ;;  %s1838_s5 = smov 56  }
 0x147   : > { %800 = vrot.lane.b32.xlu0 %v2169_v24, %s1827_s1  ;;  %813 = vrot.lane.b32.xlu2 %v2169_v24, %s1825_s3  ;;  %s2514_s1 = sld [smem:[#allocation31_spill]] }
 0x148   : > { %1471 = vrot.lane.b32.xlu1 %v1430_v37, %s1834_s20 }
 0x14f   : > { %1486 = vrot.lane.b32.xlu0 %v1430_v37, %s1835_s18  ;;  %1481 = vrot.lane.b32.xlu2 %v1430_v37, %s1836_s23 }
 0x150   : > { %591 = vrot.lane.b32.xlu1 %v2167_v23, %s1830_s7 }
 0x151   : > { %v2209_v38 = vpop.permute.xlu2 %1386 }
 0x152   : > { %v1389_v39 = vunpack.i.h.bf16 %v2209_v38 }
 0x157   : > { %1491 = vrot.lane.b32.xlu0 %v1430_v37, %s1837_s15  ;;  %578 = vrot.lane.b32.xlu2 %v2167_v23, %s1831_s22 }
 0x158   : > { %543 = vrot.lane.b32.xlu1 %v2173_v28, %s1820_s24  ;;  %s1839_s24 = smov 6  }
 0x159   : > { %v518_v40 = vpop.permute.xlu2 %517 }
 0x15a   : > { %v2219_v41 = vsel %vm519_vm0, %v1389_v39, %v518_v40 }
 0x15f   : > { %1496 = vrot.lane.b32.xlu0 %v1430_v37, %s1838_s5  ;;  %565 = vrot.lane.b32.xlu2 %v2167_v23, %s1833_s9 }
 0x160   : > { %787 = vrot.lane.b32.xlu1 %v2169_v24, %s1829_s27  ;;  %s2516_s27 = sld [smem:[#allocation21_spill]] }
 0x161   : > { %v2224_v42 = vpop.permute.xlu2 %1396 }
 0x166   : > { %s1182_s9 = sshll.u32 %s2516_s27, 3 }
 0x167   : > { %748 = vrot.lane.b32.xlu0 %v2169_v24, %s1835_s18  ;;  %552 = vrot.lane.b32.xlu2 %v2167_v23, %s1832_s8  ;;  %s1181_s8 = sshll.u32 %s2515_s12, 1  ;;  %s982_s12 = scalar_lea.sflag [#allocation5], %s2130_s30 }
 0x168   : > { %774 = vrot.lane.b32.xlu1 %v2169_v24, %s1834_s20  ;;  %s993_s20 = sadd.s32 %s1182_s9, %s1181_s8 }
 0x169   : > { %v2229_v43 = vpop.permute.xlu0 %1391  ;;  %v2231_v44 = vpop.permute.xlu2 %1411  ;;  %s1183_s18 = sshll.u32 %s993_s20, 3 }
 0x16a   : > { %v2233_v45 = vpop.permute.xlu1 %1381  ;;  %v1394_v54 = vunpack.i.h.bf16 %v2229_v43  ;;  %v1414_v62 = vunpack.i.h.bf16 %v2231_v44  ;;  %v1413_v63 = vunpack.i.l.bf16 %v2231_v44 }
 0x16b   : > { %v1384_v46 = vunpack.i.h.bf16 %v2233_v45 }
 0x16c   : > { %v664_v7 = vsel %vm662_vm5, %v1413_v63, %v1414_v62 }
 0x16f   : > { %722 = vrot.lane.b32.xlu0 %v2169_v24, %s1838_s5  ;;  %1501 = vrot.lane.b32.xlu2 %v2177_v29, %s1839_s24  ;;  %s2517_s5 = sld [smem:[#allocation34_spill]] }
 0x170   : > { %761 = vrot.lane.b32.xlu1 %v2169_v24, %s1836_s23 }
 0x171   : > { %v1402_v47 = vpop.permute.xlu0 %1401  ;;  %v2239_v48 = vpop.permute.xlu2 %1421 }
 0x172   : > { %v1404_v49 = vunpack.i.h.bf16 %v1402_v47  ;;  %v1403_v50 = vunpack.i.l.bf16 %v1402_v47  ;;  %v505_v51 = vpop.permute.xlu1 %504  ;;  %v1424_v5 = vunpack.i.h.bf16 %v2239_v48  ;;  %v1423_v6 = vunpack.i.l.bf16 %v2239_v48 }
 0x173   : > { %v2244_v52 = vsel %vm506_vm2, %v1384_v46, %v505_v51 }
 0x174   : > { %v690_v53 = vsel %vm688_vm1, %v1403_v50, %v1404_v49  ;;  %v638_v15 = vsel %vm636_vm7, %v1423_v6, %v1424_v5 }
 0x175   : > { %939 = vmatpush.msra.mxu2 %v690_v53 }
 0x177   : > { %735 = vrot.lane.b32.xlu2 %v2169_v24, %s1837_s15 }
 0x178   : > { %1506 = vrot.lane.b32.xlu1 %v2177_v29, %s1840_s16 }
 0x179   : > { %v1417_v55 = vpop.permute.xlu0 %1416  ;;  %v657_v56 = vpop.permute.xlu2 %656 }
 0x17a   : > { %v531_v57 = vpop.permute.xlu1 %530  ;;  %v1419_v2 = vunpack.i.h.bf16 %v1417_v55  ;;  %v1418_v3 = vunpack.i.l.bf16 %v1417_v55  ;;  %v663_v18 = vsel %vm662_vm5, %v657_v56, %v1413_v63  ;;  %vm780_vm5 = vcmask 367616  }
 0x17b   : > { %v2254_v58 = vsel %vm532_vm3, %v1394_v54, %v531_v57 }
 0x17c   : > { %v651_v10 = vsel %vm649_vm6, %v1418_v3, %v1419_v2 }
 0x17f   : > { %695 = vrot.lane.b32.xlu2 %v2167_v23, %s1840_s16  ;;  %s439_s16 = scalar_lea.vmem [#allocation11], %s1173_s21  ;;  %s1650_s21 = scalar_lea.hbm %s2517_s5, 128 }
 0x180   : > { %708 = vrot.lane.b32.xlu1 %v2167_v23, %s1839_s24  ;;  %s995_s24 = scalar_lea.hbm %s2517_s5, %s1183_s18  ;;  %s997_s3 = sshll.u32 %s439_s16, 4  ;;  %s998_s3 = int_to_ptr.vmem [resolvable:$true] %s997_s3 }
 0x181   : > { %v670_v59 = vpop.permute.xlu0 %669  ;;  %v644_v60 = vpop.permute.xlu2 %643  ;;  %s999_s14 = sshll.u32 %s995_s24, 4  ;;  %s1000_s14 = int_to_ptr.hbm [resolvable:$true] %s999_s14 }
 0x182   : > { %v1407_v61 = vpop.permute.xlu1 %1406  ;;  %v650_v21 = vsel %vm649_vm6, %v644_v60, %v1418_v3  ;;  %vm767_vm6 = vcmask 375808   ;;  %s1644_s27 = sshra.s32 %s1000_s14, 4  ;;  %s1645_s27 = int_to_ptr.hbm [resolvable:$true] %s1644_s27 }
 0x183   : > { %v1409_v0 = vunpack.i.h.bf16 %v1407_v61  ;;  %v1408_v1 = vunpack.i.l.bf16 %v1407_v61  ;;  %s1646_s7 = scalar_lea.hbm %s1645_s27, 16  ;;  %p1651_p13 = scmp.lt.s32.totalorder %s1645_s27, %s2517_s5 }
 0x184   : > { %p1647_p2 = scmp.ne.s32.totalorder %s1645_s27, %s1646_s7  ;;  %p1652_p0 = scmp.lt.s32.totalorder %s1650_s21, %s1646_s7 }
 0x185   : > { %v677_v4 = vsel %vm675_vm4, %v1408_v1, %v1409_v0  ;;  %v676_v17 = vsel %vm675_vm4, %v670_v59, %v1408_v1  ;;  %vm558_vm4 = vcmask 949248  }
 0x186   : > { %940 = vmatpush.msra.mxu2 %v677_v4  ;;  %p1648_p12 = pnand %p1647_p2, %p2518_p10  ;;  %p1653_p8 = por %p1652_p0, %p1651_p13 }
 0x188   : > { %941 = vmatpush.msra.mxu2 %v664_v7  ;;  %p1649_p4 = pneg %p1648_p12 }
 0x189   : > { %v2264_v8 = vpop.permute.xlu0 %1431  ;;  %v631_v9 = vpop.permute.xlu2 %630 }
 0x18a   : > { %v1434_v11 = vunpack.i.h.bf16 %v2264_v8  ;;  %v1433_v12 = vunpack.i.l.bf16 %v2264_v8  ;;  %v683_v13 = vpop.permute.xlu1 %682  ;;  %942 = vmatpush.msra.mxu2 %v651_v10  ;;  %v637_v29 = vsel %vm636_vm7, %v631_v9, %v1423_v6  ;;  %vm754_vm7 = vcmask 441344   ;;  %p1654_p7 = pnand %p1653_p8, %p1649_p4 }
 0x18b   : > { %v689_v14 = vsel %vm688_vm1, %v683_v13, %v1403_v50  ;;  %vm571_vm1 = vcmask 883712  }
 0x18c   : > { %899 = vmatpush.msra.mxu0 %v689_v14  ;;  %943 = vmatpush.msra.mxu2 %v638_v15  ;;  %v834_v16 = vsel %vm832_vm8, %v1433_v12, %v1434_v11 }
 0x18d   : > { %964 = vmatpush.msra.mxu3 %v834_v16 }
 0x18e   : > { %900 = vmatpush.msra.mxu0 %v676_v17 }
 0x190   : > { %901 = vmatpush.msra.mxu0 %v663_v18 }
 0x191   : > { %v2276_v19 = vpop.permute.xlu0 %1441  ;;  %v618_v20 = vpop.permute.xlu2 %617 }
 0x192   : > { %v1444_v22 = vunpack.i.h.bf16 %v2276_v19  ;;  %v1443_v25 = vunpack.i.l.bf16 %v2276_v19  ;;  %v1427_v26 = vpop.permute.xlu1 %1426  ;;  %902 = vmatpush.msra.mxu0 %v650_v21 }
 0x193   : > { %v1429_v27 = vunpack.i.h.bf16 %v1427_v26  ;;  %v1428_v28 = vunpack.i.l.bf16 %v1427_v26 }
 0x194   : > { %903 = vmatpush.msra.mxu0 %v637_v29  ;;  %v821_v30 = vsel %vm819_vm9, %v1443_v25, %v1444_v22 }
 0x195   : > { %v624_v31 = vsel %vm623_vm10, %v618_v20, %v1428_v28  ;;  %v625_v32 = vsel %vm623_vm10, %v1428_v28, %v1429_v27  ;;  %965 = vmatpush.msra.mxu3 %v821_v30  ;;  %vm728_vm10 = vcmask 457728  }
 0x196   : > { %904 = vmatpush.msra.mxu0 %v624_v31  ;;  %944 = vmatpush.msra.mxu2 %v625_v32 }
 0x199   : > { %v1452_v33 = vpop.permute.xlu0 %1451  ;;  %v2285_v34 = vpop.permute.xlu2 %1466 }
 0x19a   : > { %v1454_v35 = vunpack.i.h.bf16 %v1452_v33  ;;  %v1453_v36 = vunpack.i.l.bf16 %v1452_v33  ;;  %v1437_v37 = vpop.permute.xlu1 %1436  ;;  %v1469_v1 = vunpack.i.h.bf16 %v2285_v34  ;;  %v1468_v2 = vunpack.i.l.bf16 %v2285_v34 }
 0x19b   : > { %v1439_v40 = vunpack.i.h.bf16 %v1437_v37  ;;  %v1438_v44 = vunpack.i.l.bf16 %v1437_v37 }
 0x19c   : > { %v808_v47 = vsel %vm806_vm11, %v1453_v36, %v1454_v35  ;;  %v573_v6 = vsel %vm571_vm1, %v1468_v2, %v1469_v1  ;;  %v1399_v35 = vunpack.i.h.bf16 %v2224_v42 }
 0x19d   : > { %v612_v48 = vsel %vm610_vm12, %v1438_v44, %v1439_v40  ;;  %966 = vmatpush.msra.mxu3 %v808_v47  ;;  %v1393_v40 = vunpack.i.l.bf16 %v2229_v43 }
 0x19e   : > { %945 = vmatpush.msra.mxu2 %v612_v48 }
 0x1a1   : > { %v2289_v49 = vpop.permute.xlu0 %1461  ;;  %v814_v50 = vpop.permute.xlu2 %813 }
 0x1a2   : > { %v1464_v51 = vunpack.i.h.bf16 %v2289_v49  ;;  %v1463_v53 = vunpack.i.l.bf16 %v2289_v49  ;;  %v1447_v55 = vpop.permute.xlu1 %1446  ;;  %v820_v16 = vsel %vm819_vm9, %v814_v50, %v1443_v25  ;;  %vm741_vm9 = vcmask 449536  }
 0x1a3   : > { %v1449_v56 = vunpack.i.h.bf16 %v1447_v55  ;;  %v1448_v57 = vunpack.i.l.bf16 %v1447_v55  ;;  %v1388_v55 = vunpack.i.l.bf16 %v2209_v38 }
 0x1a4   : > { %v795_v59 = vsel %vm793_vm13, %v1463_v53, %v1464_v51 }
 0x1a5   : > { %v599_v60 = vsel %vm597_vm14, %v1448_v57, %v1449_v56  ;;  %967 = vmatpush.msra.mxu3 %v795_v59  ;;  %v1383_v59 = vunpack.i.l.bf16 %v2233_v45 }
 0x1a6   : > { %946 = vmatpush.msra.mxu2 %v599_v60  ;;  %v533_v60 = vsel %vm532_vm3, %v1393_v40, %v1394_v54  ;;  %vm895_vm3 = vcmask 719872  }
 0x1a7   : > { %v507_v1 = vsel %vm506_vm2, %v1383_v59, %v1384_v46  ;;  %vm701_vm2 = vcmask 56320  }
 0x1a9   : > { %v605_v61 = vpop.permute.xlu0 %604  ;;  %v2297_v62 = vpop.permute.xlu2 %1481 }
 0x1aa   : > { %v1457_v63 = vpop.permute.xlu1 %1456  ;;  %v611_v0 = vsel %vm610_vm12, %v605_v61, %v1438_v44  ;;  %v1484_v21 = vunpack.i.h.bf16 %v2297_v62  ;;  %v1483_v8 = vunpack.i.l.bf16 %v2297_v62 }
 0x1ab   : > { %v1459_v3 = vunpack.i.h.bf16 %v1457_v63  ;;  %v1458_v4 = vunpack.i.l.bf16 %v1457_v63  ;;  %905 = vmatpush.msra.mxu0 %v611_v0  ;;  %v520_v63 = vsel %vm519_vm0, %v1388_v55, %v1389_v39  ;;  %vm714_vm0 = vcmask 48128   ;;  %v893_v39 = vld [vmem:[%s2514_s1] sm:$0xff] }
 0x1ac   : > { %v769_v25 = vsel %vm767_vm6, %v1483_v8, %v1484_v21 }
 0x1ad   : > { %v586_v5 = vsel %vm584_vm15, %v1458_v4, %v1459_v3 }
 0x1ae   : > { %947 = vmatpush.msra.mxu2 %v586_v5 }
 0x1b0   : > { %948 = vmatpush.msra.mxu2 %v573_v6 }
 0x1b1   : > { %v1477_v7 = vpop.permute.xlu0 %1476  ;;  %v579_v9 = vpop.permute.xlu2 %578 }
 0x1b2   : > { %v1479_v10 = vunpack.i.h.bf16 %v1477_v7  ;;  %v1478_v11 = vunpack.i.l.bf16 %v1477_v7  ;;  %v827_v13 = vpop.permute.xlu1 %826  ;;  %v585_v34 = vsel %vm584_vm15, %v579_v9, %v1458_v4 }
 0x1b3   : > { %v833_v14 = vsel %vm832_vm8, %v827_v13, %v1433_v12  ;;  %vm545_vm8 = vcmask 957440  }
 0x1b4   : > { %924 = vmatpush.msra.mxu1 %v833_v14  ;;  %v560_v15 = vsel %vm558_vm4, %v1478_v11, %v1479_v10 }
 0x1b5   : > { %949 = vmatpush.msra.mxu2 %v560_v15 }
 0x1b6   : > { %925 = vmatpush.msra.mxu1 %v820_v16 }
 0x1b9   : > { %v801_v17 = vpop.permute.xlu0 %800  ;;  %v566_v12 = vpop.permute.xlu2 %565 }
 0x1ba   : > { %v2311_v18 = vpop.permute.xlu1 %1471  ;;  %v807_v20 = vsel %vm806_vm11, %v801_v17, %v1453_v36  ;;  %v1398_v36 = vunpack.i.l.bf16 %v2224_v42  ;;  %v572_v37 = vsel %vm571_vm1, %v566_v12, %v1468_v2 }
 0x1bb   : > { %v1474_v22 = vunpack.i.h.bf16 %v2311_v18  ;;  %v1473_v26 = vunpack.i.l.bf16 %v2311_v18  ;;  %926 = vmatpush.msra.mxu1 %v807_v20 }
 0x1bc   : > { %v546_v56 = vsel %vm545_vm8, %v1398_v36, %v1399_v35 }
 0x1bd   : > { %v782_v19 = vsel %vm780_vm5, %v1473_v26, %v1474_v22 }
 0x1be   : > { %968 = vmatpush.msra.mxu3 %v782_v19 }
 0x1c0   : > { %969 = vmatpush.msra.mxu3 %v769_v25 }
 0x1c1   : > { %v2324_v27 = vpop.permute.xlu0 %1486  ;;  %v553_v33 = vpop.permute.xlu2 %552 }
 0x1c2   : > { %v1489_v28 = vunpack.i.h.bf16 %v2324_v27  ;;  %v1488_v29 = vunpack.i.l.bf16 %v2324_v27  ;;  %v592_v30 = vpop.permute.xlu1 %591  ;;  %v559_v47 = vsel %vm558_vm4, %v553_v33, %v1478_v11  ;;  %v894_v11 = vld [vmem:[%s2514_s1 + $0x8] sm:$0xff] }
 0x1c3   : > { %v598_v31 = vsel %vm597_vm14, %v592_v30, %v1448_v57 }
 0x1c4   : > { %906 = vmatpush.msra.mxu0 %v598_v31  ;;  %v756_v32 = vsel %vm754_vm7, %v1488_v29, %v1489_v28 }
 0x1c5   : > { %970 = vmatpush.msra.mxu3 %v756_v32 }
 0x1c6   : > { %907 = vmatpush.msra.mxu0 %v585_v34 }
 0x1c8   : > { %908 = vmatpush.msra.mxu0 %v572_v37 }
 0x1c9   : > { %v1492_v44 = vpop.permute.xlu0 %1491  ;;  %v1502_v61 = vpop.permute.xlu2 %1501 }
 0x1ca   : > { %v1494_v48 = vunpack.i.h.bf16 %v1492_v44  ;;  %v1493_v50 = vunpack.i.l.bf16 %v1492_v44  ;;  %v544_v51 = vpop.permute.xlu1 %543  ;;  %909 = vmatpush.msra.mxu0 %v559_v47  ;;  %v1504_v43 = vunpack.i.h.bf16 %v1502_v61  ;;  %v1503_v54 = vunpack.i.l.bf16 %v1502_v61 }
 0x1cb   : > { %v547_v57 = vsel %vm545_vm8, %v1399_v35, %v544_v51 }
 0x1cc   : > { %910 = vmatpush.msra.mxu0 %v546_v56  ;;  %950 = vmatpush.msra.mxu2 %v547_v57  ;;  %v743_v42 = vsel %vm741_vm9, %v1493_v50, %v1494_v48  ;;  %v716_v45 = vsel %vm714_vm0, %v1503_v54, %v1504_v43 }
 0x1cd   : > { %971 = vmatpush.msra.mxu3 %v743_v42 }
 0x1ce   : > { %911 = vmatpush.msra.mxu0 %v533_v60  ;;  %951 = vmatpush.msra.mxu2 %v2254_v58 }
 0x1d0   : > { %912 = vmatpush.msra.mxu0 %v520_v63  ;;  %952 = vmatpush.msra.mxu2 %v2219_v41 }
 0x1d1   : > { %v1497_v0 = vpop.permute.xlu0 %1496 }
 0x1d2   : > { %v1499_v2 = vunpack.i.h.bf16 %v1497_v0  ;;  %v1498_v3 = vunpack.i.l.bf16 %v1497_v0  ;;  %v788_v4 = vpop.permute.xlu1 %787  ;;  %913 = vmatpush.msra.mxu0 %v507_v1  ;;  %953 = vmatpush.msra.mxu2 %v2244_v52 }
 0x1d3   : > { %v794_v38 = vsel %vm793_vm13, %v788_v4, %v1463_v53  ;;  %v736_v53 = vpop.permute.xlu2 %735 }
 0x1d4   : > { %914 = vmatpush.msra.mxu0 %v2167_v23  ;;  %927 = vmatpush.msra.mxu1 %v794_v38  ;;  %v730_v41 = vsel %vm728_vm10, %v1498_v3, %v1499_v2  ;;  %v742_v6 = vsel %vm741_vm9, %v736_v53, %v1493_v50 }
 0x1d5   : > { %954 = vmatpush.msra.mxu2 %v2169_v24  ;;  %972 = vmatpush.msra.mxu3 %v730_v41 }
 0x1d6   : > { %955 = vmatmul.f32.vlgmr.msra.gmra.mxu2 %v893_v39  ;;  %915 = vmatmul.f32.vlgmr.msra.gmra.mxu0 %v893_v39 }
 0x1d7   : > { %973 = vmatpush.msra.mxu3 %v716_v45 }
 0x1d9   : > { %v749_v58 = vpop.permute.xlu0 %748 }
 0x1da   : > { %v775_v46 = vpop.permute.xlu1 %774  ;;  %v755_v24 = vsel %vm754_vm7, %v749_v58, %v1488_v29 }
 0x1db   : > { %v781_v52 = vsel %vm780_vm5, %v775_v46, %v1473_v26  ;;  %v696_v16 = vpop.permute.xlu2 %695 }
 0x1dc   : > { %928 = vmatpush.msra.mxu1 %v781_v52 }
 0x1e1   : > { %v723_v5 = vpop.permute.xlu0 %722 }
 0x1e2   : > { %v762_v49 = vpop.permute.xlu1 %761  ;;  %v729_v7 = vsel %vm728_vm10, %v723_v5, %v1498_v3 }
 0x1e3   : > { %v768_v23 = vsel %vm767_vm6, %v762_v49, %v1483_v8 }
 0x1e4   : > { %929 = vmatpush.msra.mxu1 %v768_v23 }
 0x1e6   : > { %930 = vmatpush.msra.mxu1 %v755_v24 }
 0x1e8   : > { %931 = vmatpush.msra.mxu1 %v742_v6 }
 0x1ea   : > { %v1507_v9 = vpop.permute.xlu1 %1506  ;;  %932 = vmatpush.msra.mxu1 %v729_v7 }
 0x1eb   : > { %v1509_v62 = vunpack.i.h.bf16 %v1507_v9  ;;  %v1508_v10 = vunpack.i.l.bf16 %v1507_v9 }
 0x1ed   : > { %v703_v13 = vsel %vm701_vm2, %v1508_v10, %v1509_v62  ;;  %v702_v17 = vsel %vm701_vm2, %v696_v16, %v1508_v10 }
 0x1ee   : > { %974 = vmatpush.msra.mxu3 %v703_v13 }
 0x1ef   : > { %1179 = vmatmul.msk.f32.vlgmr.msra.gmra.mxu3 %vm895_vm3, %v894_v11 }
 0x1f2   : > { %v709_v14 = vpop.permute.xlu1 %708 }
 0x1f3   : > { %v715_v15 = vsel %vm714_vm0, %v709_v14, %v1503_v54 }
 0x1f4   : > { %933 = vmatpush.msra.mxu1 %v715_v15 }
 0x1f6   : > { %934 = vmatpush.msra.mxu1 %v702_v17 }
 0x1f7   : > { %1178 = vmatmul.msk.f32.vlgmr.msra.gmra.mxu1 %vm895_vm3, %v894_v11 }
 0x253   : > { %v916_v20 = vpop.f32.mrf.mxu0 }
 0x259   : > { %v956_v18 = vpop.f32.mrf.mxu2 }
 0x272   : > { %v976_v21 = vpop.f32.mrf.mxu3 }
 0x273   : > { %v977_v8 = vadd.f32 %v976_v21, %v956_v18 }
 0x274   : > { %v936_v12 = vpop.f32.mrf.mxu1 }
 0x275   : > { %v937_v22 = vadd.f32 %v936_v12, %v916_v20  ;;  %980 = vst [vmem:[%s439_s16 + $0x8] sm:$0xff] %v977_v8 }
 0x277   : > { %979 = vst [vmem:[%s439_s16] sm:$0xff] %v937_v22 }
 0x278   : > { %1657 = shalt.err (!%p1654_p7)
}
 0x279   : > { %1195 = dma.vmem_to_hbm [thread:$0]  (%p2518_p10), %s998_s3, 256, %s1000_s14, %s982_s12  }
 0x27a PF: > { %p1215_p5 = scmp.ge.s32.totalorder %s1812_s17, 2  ;;  %s1011_s30 = sand.u32 1, %s1784_s10  }
 0x27b   : > { %p2519_p11 = scmp.ne.s32.totalorder %s2503_s13, 0  ;;  %s1012_s18 = scalar_lea.sflag [#allocation5], %s1011_s30 }
 0x27d   : > { %p1211_p3 = pnand %p1215_p5, %p2519_p11 }
 0x27f   : > { %p1212_p6 = pneg %p1211_p3 }
 0x281   : > { %1743 = dma.done.wait (%p1212_p6), %s1012_s18, 256  }
 0x282   : > { %1745 = vsyncadd (%p1212_p6), %s1012_s18, 4294967040  ;;  %s29_s17 = sadd.s32 1, %s1812_s17   ;;  %s2521_s30 = sld [smem:[#allocation17_spill]] }
 0x283   : > { %p2401_p9 = scmp.ge.s32.totalorder %s29_s17, 10   ;;  %s2522_s8 = sld [smem:[#allocation18_spill]] }
 0x284   : > { %s2523_s9 = sld [smem:[#allocation27_spill]]  ;;  %s2530_s24 = smov %s1752_s25 }
 0x285   : > { %s2524_s4 = sld [smem:[#allocation19_spill]]  ;;  %s2531_s25 = smov %s1756_s26 }
 0x286   : > { %s2525_s12 = sld [smem:[#allocation28_spill]]  ;;  %s2532_s26 = smov %s2108_s6 }
 0x287   : > { %s2526_s13 = sld [smem:[#allocation22_spill]]  ;;  %s2533_s27 = smov %s1764_s28 }
 0x288   : > { %s2527_s14 = sld [smem:[#allocation23_spill]]  ;;  %s2534_s28 = smov %s1768_s29 }
 0x289   : > { %s2528_s15 = sld [smem:[#allocation24_spill]]  ;;  %s2535_s29 = smov %s2080_s19 }
 0x28a   : > { %s2529_s16 = sld [smem:[#allocation25_spill]]  ;;  %s2536_s10 = smov %s1788_s11 }
 0x28b   : > { %s2537_s11 = smov %s2524_s4  ;;  %28 = sbr.rel (!%p2401_p9) target bundleno = 23 (0x17), region = 130 }
 0x290   :  { %1018 = vsyncpa [#allocation4], 1 }
 0x291   :  { %1020 = vsyncpa [#allocation4 + $0x1], 1 }
 0x292   :  { %1021 = vsyncpa [#allocation7], 1 }
 0x293   :  { %1023 = vsyncpa [#allocation7 + $0x1], 1 }
 0x294   :  { %1024 = vsyncpa [#allocation10], 1 }
 0x295   :  { %1026 = vsyncpa [#allocation10 + $0x1], 1 }
 0x296   :  { %1027 = vsyncpa [#allocation5], 1 }
 0x297   :  { %1029 = vsyncpa [#allocation5 + $0x1], 1 }

</bundles_post_ra>
